<compile_context>
chip_gen: v7x
topology: tpu7x:2x2x1
jax: 0.10.0
libtpu: 0.0.40
codegen_flags: <defaults>
</compile_context>

<pallas_src>
import jax
import jax.numpy as jnp
from jax import lax
from jax.experimental import pallas as pl
from jax.experimental.pallas import tpu as pltpu


def _ffn_kernel(x_ref, w1_ref, b1_ref, w2_ref, b2_ref, o_ref, acc_ref):
    # x_ref:  (tm, n_pad)
    # w1_ref: (td, n_pad)    -- a row-block of PyTorch-layout W1 (d_units, n_units)
    # b1_ref: (1, td)
    # w2_ref: (n_pad, td)    -- a column-block of PyTorch-layout W2 (n_units, d_units)
    # b2_ref: (1, n_pad)
    # o_ref:  (tm, n_pad)
    # acc_ref:(tm, n_pad) f32 scratch accumulator (resident across the k axis)
    k = pl.program_id(1)

    @pl.when(k == 0)
    def _():
        acc_ref[...] = jnp.zeros_like(acc_ref)

    x = x_ref[...]
    # h_k = relu(x @ W1[k_block, :].T + b1[k_block])   -> (tm, td), f32 accum on MXU
    h = lax.dot_general(
        x, w1_ref[...],
        dimension_numbers=(((1,), (1,)), ((), ())),
        preferred_element_type=jnp.float32,
    )
    h = jnp.maximum(h + b1_ref[...], 0.0)

    # dropout == identity (inference mode)

    # acc += h_k @ W2[:, k_block].T   -> (tm, n_pad)
    acc_ref[...] += lax.dot_general(
        h.astype(x.dtype), w2_ref[...],
        dimension_numbers=(((1,), (1,)), ((), ())),
        preferred_element_type=jnp.float32,
    )

    @pl.when(k == pl.num_programs(1) - 1)
    def _():
        o_ref[...] = (acc_ref[...] + b2_ref[...]).astype(o_ref.dtype)


def _round_up(v, m):
    return ((v + m - 1) // m) * m


def positionwise_feed_forward(x, w1, b1, w2, b2, *, tm=256, td=512,
                              vmem_limit_bytes=48 * 1024 * 1024):
    """Inference-mode PositionwiseFeedForward.

    x:  (B, T, n_units)
    w1: (d_units, n_units)   -- nn.Linear(n_units, d_units).weight (PyTorch layout)
    b1: (d_units,)
    w2: (n_units, d_units)   -- nn.Linear(d_units, n_units).weight
    b2: (n_units,)
    Returns (B, T, n_units).
    """
    B, T, n_units = x.shape
    d_units = w1.shape[0]
    assert w1.shape == (d_units, n_units)
    assert w2.shape == (n_units, d_units)
    assert b1.shape == (d_units,) and b2.shape == (n_units,)
    assert tm % 8 == 0 and td % 128 == 0
    M = B * T

    # --- hardware-friendly tile sizes & padded dims --------------------------
    m8 = _round_up(M, 8)
    tm_eff = min(tm, m8)                 # don't over-pad tiny inputs
    m_pad = _round_up(M, tm_eff)

    d8 = _round_up(d_units, 8)
    td_eff = d8 if d8 <= td else td      # either full hidden dim or a 128-multiple tile
    d_pad = _round_up(d_units, td_eff)

    n_pad = _round_up(n_units, 128)      # lane-dense loads/stores

    # --- zero-pad operands (exact: padded rows/cols contribute nothing to the
    #     rows/cols we slice back out; no-ops when dims are already aligned) ---
    x2 = x.reshape(M, n_units)
    if (m_pad, n_pad) != (M, n_units):
        x2 = jnp.pad(x2, ((0, m_pad - M), (0, n_pad - n_units)))
    w1p = w1 if (d_pad, n_pad) == (d_units, n_units) else jnp.pad(
        w1, ((0, d_pad - d_units), (0, n_pad - n_units)))
    w2p = w2 if (n_pad, d_pad) == (n_units, d_units) else jnp.pad(
        w2, ((0, n_pad - n_units), (0, d_pad - d_units)))
    b1p = (b1 if d_pad == d_units else jnp.pad(b1, (0, d_pad - d_units))).reshape(1, d_pad)
    b2p = (b2 if n_pad == n_units else jnp.pad(b2, (0, n_pad - n_units))).reshape(1, n_pad)

    grid = (m_pad // tm_eff, d_pad // td_eff)

    out = pl.pallas_call(
        _ffn_kernel,
        out_shape=jax.ShapeDtypeStruct((m_pad, n_pad), x.dtype),
        grid_spec=pltpu.PrefetchScalarGridSpec(
            num_scalar_prefetch=0,
            grid=grid,
            in_specs=[
                pl.BlockSpec((tm_eff, n_pad), lambda i, k: (i, 0)),   # x rows
                pl.BlockSpec((td_eff, n_pad), lambda i, k: (k, 0)),   # W1 row-block
                pl.BlockSpec((1, td_eff),     lambda i, k: (0, k)),   # b1 chunk
                pl.BlockSpec((n_pad, td_eff), lambda i, k: (0, k)),   # W2 col-block
                pl.BlockSpec((1, n_pad),      lambda i, k: (0, 0)),   # b2
            ],
            out_specs=pl.BlockSpec((tm_eff, n_pad), lambda i, k: (i, 0)),
            scratch_shapes=[pltpu.VMEM((tm_eff, n_pad), jnp.float32)],
        ),
        compiler_params=pltpu.CompilerParams(
            dimension_semantics=("parallel", "arbitrary"),
            vmem_limit_bytes=vmem_limit_bytes,
        ),
    )(x2, w1p, b1p, w2p, b2p)

    return out[:M, :n_units].reshape(B, T, n_units)


def _reference(x, w1, b1, w2, b2):
    h = jnp.maximum(jnp.einsum("btc,dc->btd", x, w1) + b1, 0.0)
    return jnp.einsum("btd,cd->btc", h, w2) + b2


if __name__ == "__main__":
    # Small shapes consistent with the module: (B, T, n_units) with hidden d_units.
    B, T, n_units, d_units = 2, 8, 32, 64
    dropout_rate = 0.1  # inference -> identity

    key = jax.random.PRNGKey(0)
    kx, k1, k2, k3, k4 = jax.random.split(key, 5)

    x = jax.random.normal(kx, (B, T, n_units), dtype=jnp.float32)
    # Parameter shapes match nn.Linear(n_units, d_units) / nn.Linear(d_units, n_units).
    w1 = jax.random.normal(k1, (d_units, n_units), dtype=jnp.float32) * 0.05
    b1 = jax.random.normal(k2, (d_units,), dtype=jnp.float32) * 0.05
    w2 = jax.random.normal(k3, (n_units, d_units), dtype=jnp.float32) * 0.05
    b2 = jax.random.normal(k4, (n_units,), dtype=jnp.float32) * 0.05

    y = positionwise_feed_forward(x, w1, b1, w2, b2)
    y = jax.block_until_ready(y)

    y_ref = _reference(x, w1, b1, w2, b2)
    assert y.shape == (B, T, n_units)
    assert jnp.allclose(y, y_ref, atol=1e-5, rtol=1e-5), "mismatch vs reference"

    print("KERNEL_OK")
</pallas_src>

<mosaic_0001>
module attributes {stable_mosaic.version = 11 : i64} {
  func.func @_ffn_kernel(%arg0: i32, %arg1: i32, %arg2: memref<16x128xf32, #tpu.memory_space<vmem>>, %arg3: memref<64x128xf32, #tpu.memory_space<vmem>>, %arg4: memref<1x64xf32, #tpu.memory_space<vmem>>, %arg5: memref<128x64xf32, #tpu.memory_space<vmem>>, %arg6: memref<1x128xf32, #tpu.memory_space<vmem>>, %arg7: memref<16x128xf32, #tpu.memory_space<vmem>>, %arg8: memref<16x128xf32, #tpu.memory_space<vmem>>) attributes {dimension_semantics = [#tpu.dimension_semantics<parallel>, #tpu.dimension_semantics<arbitrary>], iteration_bounds = array<i64: 1, 1>, scalar_prefetch = 0 : i64, scratch_operands = 1 : i64, tpu.core_type = #tpu.core_type<tc>, window_params = [{transform_indices = @transform_0, window_bounds = array<i64: 16, 128>}, {transform_indices = @transform_1, window_bounds = array<i64: 64, 128>}, {transform_indices = @transform_2, window_bounds = array<i64: 1, 64>}, {transform_indices = @transform_3, window_bounds = array<i64: 128, 64>}, {pipeline_mode = #tpu.pipeline_mode<synchronous>, transform_indices = @transform_4, window_bounds = array<i64: 1, 128>}, {transform_indices = @transform_5, window_bounds = array<i64: 16, 128>}]} {
    %c0_i32 = arith.constant 0 : i32
    %0 = arith.cmpi eq, %arg1, %c0_i32 : i32
    %1 = arith.extui %0 : i1 to i32
    %c0_i32_0 = arith.constant 0 : i32
    %2 = arith.cmpi ne, %1, %c0_i32_0 : i32
    scf.if %2 {
      %cst_16 = arith.constant 0.000000e+00 : f32
      %19 = vector.broadcast %cst_16 : f32 to vector<16x128xf32>
      %c0_17 = arith.constant 0 : index
      %c0_18 = arith.constant 0 : index
      %20 = vector.load %arg8[%c0_17, %c0_18] : memref<16x128xf32, #tpu.memory_space<vmem>>, vector<16x128xf32>
      tpu.vector_store %arg8[%c0_17, %c0_18], %19 {strides = array<i32>} : memref<16x128xf32, #tpu.memory_space<vmem>>, vector<16x128xf32>,
    } else {
    }
    %c0 = arith.constant 0 : index
    %c0_1 = arith.constant 0 : index
    %3 = vector.load %arg2[%c0, %c0_1] : memref<16x128xf32, #tpu.memory_space<vmem>>, vector<16x128xf32>
    %c0_2 = arith.constant 0 : index
    %c0_3 = arith.constant 0 : index
    %4 = vector.load %arg3[%c0_2, %c0_3] : memref<64x128xf32, #tpu.memory_space<vmem>>, vector<64x128xf32>
    %cst = arith.constant dense<0.000000e+00> : vector<16x64xf32>
    %5 = tpu.matmul %3, %4, %cst {dimension_numbers = #tpu.dot_dimension_numbers<[1], [1], [0], [0], [0, 0, 1, 0], [], []>} : vector<16x128xf32>, vector<64x128xf32>, vector<16x64xf32> -> vector<16x64xf32>
    %c0_4 = arith.constant 0 : index
    %c0_5 = arith.constant 0 : index
    %6 = vector.load %arg4[%c0_4, %c0_5] : memref<1x64xf32, #tpu.memory_space<vmem>>, vector<1x64xf32>
    %7 = vector.broadcast %6 : vector<1x64xf32> to vector<16x64xf32>
    %8 = arith.addf %5, %7 : vector<16x64xf32>
    %cst_6 = arith.constant 0.000000e+00 : f32
    %9 = vector.broadcast %cst_6 : f32 to vector<16x64xf32>
    %10 = arith.maximumf %8, %9 : vector<16x64xf32>
    %c0_7 = arith.constant 0 : index
    %c0_8 = arith.constant 0 : index
    %11 = vector.load %arg8[%c0_7, %c0_8] : memref<16x128xf32, #tpu.memory_space<vmem>>, vector<16x128xf32>
    %c0_9 = arith.constant 0 : index
    %c0_10 = arith.constant 0 : index
    %12 = vector.load %arg5[%c0_9, %c0_10] : memref<128x64xf32, #tpu.memory_space<vmem>>, vector<128x64xf32>
    %cst_11 = arith.constant dense<0.000000e+00> : vector<16x128xf32>
    %13 = tpu.matmul %10, %12, %cst_11 {dimension_numbers = #tpu.dot_dimension_numbers<[1], [1], [0], [0], [0, 0, 1, 0], [], []>} : vector<16x64xf32>, vector<128x64xf32>, vector<16x128xf32> -> vector<16x128xf32>
    %14 = arith.addf %11, %13 : vector<16x128xf32>
    %c0_12 = arith.constant 0 : index
    %c0_13 = arith.constant 0 : index
    %15 = vector.load %arg8[%c0_12, %c0_13] : memref<16x128xf32, #tpu.memory_space<vmem>>, vector<16x128xf32>
    tpu.vector_store %arg8[%c0_12, %c0_13], %14 {strides = array<i32>} : memref<16x128xf32, #tpu.memory_space<vmem>>, vector<16x128xf32>,
    %c0_i32_14 = arith.constant 0 : i32
    %16 = arith.cmpi eq, %arg1, %c0_i32_14 : i32
    %17 = arith.extui %16 : i1 to i32
    %c0_i32_15 = arith.constant 0 : i32
    %18 = arith.cmpi ne, %17, %c0_i32_15 : i32
    scf.if %18 {
      %c0_16 = arith.constant 0 : index
      %c0_17 = arith.constant 0 : index
      %19 = vector.load %arg8[%c0_16, %c0_17] : memref<16x128xf32, #tpu.memory_space<vmem>>, vector<16x128xf32>
      %c0_18 = arith.constant 0 : index
      %c0_19 = arith.constant 0 : index
      %20 = vector.load %arg6[%c0_18, %c0_19] : memref<1x128xf32, #tpu.memory_space<vmem>>, vector<1x128xf32>
      %21 = vector.broadcast %20 : vector<1x128xf32> to vector<16x128xf32>
      %22 = arith.addf %19, %21 : vector<16x128xf32>
      %c0_20 = arith.constant 0 : index
      %c0_21 = arith.constant 0 : index
      %23 = vector.load %arg7[%c0_20, %c0_21] : memref<16x128xf32, #tpu.memory_space<vmem>>, vector<16x128xf32>
      tpu.vector_store %arg7[%c0_20, %c0_21], %22 {strides = array<i32>} : memref<16x128xf32, #tpu.memory_space<vmem>>, vector<16x128xf32>,
    } else {
    }
    return
  }
  func.func @transform_0(%arg0: i32, %arg1: i32) -> (i32, i32) {
    %c0_i32 = arith.constant 0 : i32
    %c0_i32_0 = arith.constant 0 : i32
    return %arg0, %c0_i32 : i32, i32
  }
  func.func @transform_1(%arg0: i32, %arg1: i32) -> (i32, i32) {
    %c0_i32 = arith.constant 0 : i32
    %c0_i32_0 = arith.constant 0 : i32
    return %arg1, %c0_i32 : i32, i32
  }
  func.func @transform_2(%arg0: i32, %arg1: i32) -> (i32, i32) {
    %c0_i32 = arith.constant 0 : i32
    %c0_i32_0 = arith.constant 0 : i32
    return %c0_i32, %arg1 : i32, i32
  }
  func.func @transform_3(%arg0: i32, %arg1: i32) -> (i32, i32) {
    %c0_i32 = arith.constant 0 : i32
    %c0_i32_0 = arith.constant 0 : i32
    return %c0_i32, %arg1 : i32, i32
  }
  func.func @transform_4(%arg0: i32, %arg1: i32) -> (i32, i32) {
    %c0_i32 = arith.constant 0 : i32
    %c0_i32_0 = arith.constant 0 : i32
    %c0_i32_1 = arith.constant 0 : i32
    return %c0_i32, %c0_i32_0 : i32, i32
  }
  func.func @transform_5(%arg0: i32, %arg1: i32) -> (i32, i32) {
    %c0_i32 = arith.constant 0 : i32
    %c0_i32_0 = arith.constant 0 : i32
    return %arg0, %c0_i32 : i32, i32
  }
}

</mosaic_0001>

<bundles_post_ra>
// kernel: tpu_custom_call.1
= control target key start
LH: loop header
LB: loop body
LE: loop exit
PB: predicated region body
PF: predicated region fallthrough
CT: control target
= control target key end

     0   :  { %vm139_vm0 = vcmask 523264   ;;  %s667_s0 = inlined_call_operand.vmem [shape: f32[16,128], index: 0, kind: input, shape index: {}]   ;;  %s668_s1 = inlined_call_operand.vmem [shape: f32[64,128], index: 1, kind: input, shape index: {}]   ;;  %s669_s2 = inlined_call_operand.vmem [shape: f32[1,64], index: 2, kind: input, shape index: {}]   ;;  %s670_s3 = inlined_call_operand.vmem [shape: f32[128,64], index: 3, kind: input, shape index: {}]   ;;  %s671_s4 = inlined_call_operand.vmem [shape: f32[1,128], index: 4, kind: input, shape index: {}]   ;;  %s672_s5 = inlined_call_operand.hbm [shape: f32[16,128], index: 5, kind: output, shape index: {}]  }
   0x1   :  { %v29_v0 = vld [vmem:[%s668_s1] sm:$0xff]  ;;  %v30_v1 = vld [vmem:[%s668_s1 + $0x8] sm:$0xff]  ;;  %v31_v2 = vld [vmem:[%s668_s1 + $0x10] sm:$0xff] }
   0x2   :  { %v407_v3 = vpack.c.bf16 %v30_v1, %v29_v0  ;;  %v32_v4 = vld [vmem:[%s668_s1 + $0x18] sm:$0xff]  ;;  %v27_v6 = vld [vmem:[%s667_s0] sm:$0xff]  ;;  %v124_v8 = vld [vmem:[%s670_s3 + $0x8] sm:$0xff] }
   0x3   :  { %v411_v5 = vpack.c.bf16 %v32_v4, %v31_v2  ;;  %369 = vmatprep.mubr.f32.mxu0 %v27_v6  ;;  %v123_v7 = vld [vmem:[%s670_s3] sm:$0xff]  ;;  %vm554_vm1 = vmpackc.low %vm139_vm0, %vm139_vm0  ;;  %v125_v11 = vld [vmem:[%s670_s3 + $0x10] sm:$0xff] }
   0x4   :  { %408 = vmatprep.subr.bf16.mxu0 %v407_v3  ;;  %v423_v9 = vpack.c.bf16 %v124_v8, %v123_v7  ;;  %v126_v12 = vld [vmem:[%s670_s3 + $0x18] sm:$0xff]  ;;  %v33_v14 = vld [vmem:[%s668_s1 + $0x20] sm:$0xff]  ;;  %v34_v15 = vld [vmem:[%s668_s1 + $0x28] sm:$0xff] }
   0x5   :  { %410 = vmatpush3.bf16.xpose.msra.mxu0 %v407_v3  ;;  %v429_v13 = vpack.c.bf16 %v126_v12, %v125_v11  ;;  %v415_v16 = vpack.c.bf16 %v34_v15, %v33_v14  ;;  %v127_v17 = vld [vmem:[%s670_s3 + $0x20] sm:$0xff]  ;;  %v128_v18 = vld [vmem:[%s670_s3 + $0x28] sm:$0xff] }
   0x6   :  { %412 = vmatprep.subr.bf16.mxu0 %v411_v5  ;;  %425 = vmatprep.subr.msk.bf16.mxu1 %vm554_vm1, %v423_v9 }
   0x7   :  { %428 = vmatpush3.bf16.xpose.msk.msra.mxu1 %vm554_vm1, %v423_v9 }
   0x8   :  { %431 = vmatprep.subr.msk.bf16.mxu1 %vm554_vm1, %v429_v13 }
   0x9   :  { %10 = vsyncpa [#allocation4], 0  ;;  %v435_v19 = vpack.c.bf16 %v128_v18, %v127_v17  ;;  %v35_v20 = vld [vmem:[%s668_s1 + $0x30] sm:$0xff]  ;;  %v36_v21 = vld [vmem:[%s668_s1 + $0x38] sm:$0xff]  ;;  %s498_s21 = smov [#allocation3]  }
   0xa   :  { %v419_v22 = vpack.c.bf16 %v36_v21, %v35_v20  ;;  %v129_v23 = vld [vmem:[%s670_s3 + $0x30] sm:$0xff]  ;;  %v130_v24 = vld [vmem:[%s670_s3 + $0x38] sm:$0xff]  ;;  %v131_v26 = vld [vmem:[%s670_s3 + $0x40] sm:$0xff]  ;;  %s294_s22 = sshll.u32 %s498_s21, 4  ;;  %s295_s22 = int_to_ptr.vmem [resolvable:$true] %s294_s22 }
   0xb   :  { %v441_v25 = vpack.c.bf16 %v130_v24, %v129_v23  ;;  %v132_v27 = vld [vmem:[%s670_s3 + $0x48] sm:$0xff]  ;;  %v133_v30 = vld [vmem:[%s670_s3 + $0x50] sm:$0xff]  ;;  %v134_v31 = vld [vmem:[%s670_s3 + $0x58] sm:$0xff]  ;;  %p479_p1 = scmp.lt.s32.totalorder %s295_s22, %s295_s22 }
   0xc   :  { %v447_v28 = vpack.c.bf16 %v132_v27, %v131_v26  ;;  %v28_v29 = vld [vmem:[%s667_s0 + $0x8] sm:$0xff]  ;;  %v453_v32 = vpack.c.bf16 %v134_v31, %v133_v30  ;;  %v135_v33 = vld [vmem:[%s670_s3 + $0x60] sm:$0xff]  ;;  %v137_v36 = vld [vmem:[%s670_s3 + $0x70] sm:$0xff] }
   0xd   :  { %414 = vmatpush3.bf16.xpose.msra.mxu0 %v411_v5  ;;  %v136_v34 = vld [vmem:[%s670_s3 + $0x68] sm:$0xff]  ;;  %v138_v37 = vld [vmem:[%s670_s3 + $0x78] sm:$0xff]  ;;  %v305_v39 = vld [vmem:[%s669_s2] ss:$0 sm:$0xff]  ;;  %s474_s2 = scalar_lea.vmem %s295_s22, 256 }
   0xe   :  { %416 = vmatprep.subr.bf16.mxu0 %v415_v16  ;;  %v459_v35 = vpack.c.bf16 %v136_v34, %v135_v33  ;;  %v465_v38 = vpack.c.bf16 %v138_v37, %v137_v36  ;;  %v324_v46 = vld [vmem:[%s671_s4] ss:$0 sm:$0xff]  ;;  %p475_p0 = scmp.ne.s32.totalorder %s295_s22, %s474_s2  ;;  %p480_p2 = scmp.lt.s32.totalorder %s474_s2, %s474_s2 }
   0xf   :  { %434 = vmatpush3.bf16.xpose.msk.msra.mxu1 %vm554_vm1, %v429_v13 }
  0x10   :  { %437 = vmatprep.subr.msk.bf16.mxu1 %vm554_vm1, %v435_v19  ;;  %p481_p3 = por %p480_p2, %p479_p1 }
  0x12   :  { %p482_p4 = pnand %p481_p3, %p475_p0 }
  0x15   :  { %418 = vmatpush3.bf16.xpose.msra.mxu0 %v415_v16 }
  0x16   :  { %420 = vmatprep.subr.bf16.mxu0 %v419_v22 }
  0x17   :  { %440 = vmatpush3.bf16.xpose.msk.msra.mxu1 %vm554_vm1, %v435_v19 }
  0x18   :  { %443 = vmatprep.subr.msk.bf16.mxu1 %vm554_vm1, %v441_v25 }
  0x1d   :  { %422 = vmatpush3.bf16.xpose.msra.mxu0 %v419_v22 }
  0x1f   :  { %446 = vmatpush3.bf16.xpose.msk.msra.mxu1 %vm554_vm1, %v441_v25 }
  0x20   :  { %449 = vmatprep.subr.msk.bf16.mxu1 %vm554_vm1, %v447_v28 }
  0x24   :  { %370 = vmatmul.mubr.f32.vlgmr.msra.gmra.mrb[0].mxu0 %v28_v29 }
  0x27   :  { %452 = vmatpush3.bf16.xpose.msk.msra.mxu1 %vm554_vm1, %v447_v28 }
  0x28   :  { %455 = vmatprep.subr.msk.bf16.mxu1 %vm554_vm1, %v453_v32 }
  0x2f   :  { %458 = vmatpush3.bf16.xpose.msk.msra.mxu1 %vm554_vm1, %v453_v32 }
  0x30   :  { %461 = vmatprep.subr.msk.bf16.mxu1 %vm554_vm1, %v459_v35 }
  0x37   :  { %464 = vmatpush3.bf16.xpose.msk.msra.mxu1 %vm554_vm1, %v459_v35 }
  0x38   :  { %467 = vmatprep.subr.msk.bf16.mxu1 %vm554_vm1, %v465_v38 }
  0x3f   :  { %470 = vmatpush3.bf16.xpose.msk.msra.mxu1 %vm554_vm1, %v465_v38 }
  0xf7   :  { %v371_v40 = vpop.f32.mrb[0].mxu0 }
  0xf8   :  { %v116_v41 = vadd.f32 %v371_v40, %v305_v39  ;;  %v110_v42 = vpop.f32.mrb[1].mxu0 }
  0xf9   :  { %v111_v43 = vadd.f32 %v305_v39, %v110_v42 }
  0xfa   :  { %v120_v45 = vmax.f32 %v116_v41, 0.0 }
  0xfb   :  { %v119_v44 = vmax.f32 %v111_v43, 0.0 }
  0xfd   :  { %404 = vmatprep.mubr.msk.f32.mxu1 %vm139_vm0, %v119_v44 }
  0xfe   :  { %405 = vmatmul.mubr.msk.f32.vlgmr.msra.gmra.mrb[0].mxu1 %vm139_vm0, %v120_v45 }
 0x1d1   :  { %v406_v47 = vpop.f32.mrb[0].mxu1 }
 0x1d2   :  { %v286_v48 = vadd.f32 %v406_v47, %v324_v46  ;;  %v260_v49 = vpop.f32.mrb[1].mxu1 }
 0x1d3   :  { %v285_v50 = vadd.f32 %v324_v46, %v260_v49 }
 0x1d4   :  { %288 = vst [vmem:[#allocation3 + $0x8] sm:$0xff] %v286_v48 }
 0x1d5   :  { %287 = vst [vmem:[#allocation3] sm:$0xff] %v285_v50 }
 0x1d6   :  { %485 = shalt.err (!%p482_p4)
}
 0x1d7   :  { %s486_s4 = scalar_lea.hbm %s672_s5, 256 }
 0x1d8   :  { %p487_p5 = scmp.ne.s32.totalorder %s672_s5, %s486_s4  ;;  %p490_p6 = scmp.lt.u32.totalorder %s486_s4, %s672_s5 }
 0x1da   :  { %p492_p7 = pnand %p490_p6, %p487_p5 }
 0x1dc   :  { %495 = shalt.err (!%p492_p7)
}
 0x1dd   :  { %s499_s28 = smov 128   ;;  %s500_s29 = smov 8  }
 0x1de   :  { %300 = dma.vmem_to_hbm [thread:$0]  %s295_s22, 256, %s672_s5, [#allocation4], %s499_s28, %s499_s28, %s500_s29  }
 0x1df   :  { %496 = dma.done.wait [#allocation4], 256  }
 0x1e0   :  { %497 = vsyncadd [#allocation4], 4294967040 }
 0x1e1   :  { %304 = vsyncpa [#allocation4], 1 }

</bundles_post_ra>
